<compile_context>
chip_gen: v5e
topology: v5e:2x2
jax: 0.10.0
libtpu: 0.0.40
codegen_flags: <defaults>
</compile_context>

<pallas_src>
import jax
import jax.numpy as jnp
from jax.experimental import pallas as pl
from jax.experimental.pallas import tpu as pltpu


def _round_up(x, m):
    return ((x + m - 1) // m) * m


def _linear_kernel_f32(x_ref, w_ref, b_ref, o_ref):
    # x_ref: (TM, TK)   activation tile
    # w_ref: (TN, TK)   weight tile in natural (out, in) layout
    # b_ref: (1, TN)    bias tile
    # o_ref: (TM, TN)   f32 output tile; its block index ignores k, so it stays
    #                   resident in VMEM across the K reduction and doubles as
    #                   the accumulator (no scratch, no final copy/cast).
    part = jax.lax.dot_general(
        x_ref[...], w_ref[...],
        dimension_numbers=(((1,), (1,)), ((), ())),   # contract last dims: x @ W^T
        preferred_element_type=jnp.float32,
    )

    @pl.when(pl.program_id(2) == 0)
    def _():
        o_ref[...] = part + b_ref[...]

    @pl.when(pl.program_id(2) > 0)
    def _():
        o_ref[...] += part


def _linear_kernel_acc(x_ref, w_ref, b_ref, o_ref, acc_ref):
    # Variant for non-f32 outputs (e.g. bf16): f32 VMEM accumulator, bias add
    # and downcast only on the last K step.
    @pl.when(pl.program_id(2) == 0)
    def _():
        acc_ref[...] = jnp.zeros_like(acc_ref)

    acc_ref[...] += jax.lax.dot_general(
        x_ref[...], w_ref[...],
        dimension_numbers=(((1,), (1,)), ((), ())),
        preferred_element_type=jnp.float32,
    )

    @pl.when(pl.program_id(2) == pl.num_programs(2) - 1)
    def _():
        o_ref[...] = (acc_ref[...] + b_ref[...].astype(jnp.float32)).astype(o_ref.dtype)


def grad_linear_forward(x, weights, bias, *, tm=512, tn=512, tk=512,
                        force_pallas=False, interpret=False):
    """Pallas equivalent of GradLinear.forward: F.linear(x, weights, bias).

    x:       (..., in_features)
    weights: (out_features, in_features)   -- PyTorch nn.Linear layout
    bias:    (out_features,)
    returns: (..., out_features)
    """
    *lead, in_f = x.shape
    out_f, in_f_w = weights.shape
    assert in_f == in_f_w, "in_features mismatch between x and weights"

    m = 1
    for d in lead:
        m *= int(d)

    out_dtype = jnp.result_type(x.dtype, weights.dtype)

    if m == 0:
        return jnp.zeros((*lead, out_f), dtype=out_dtype)

    # Tiny problems: padding to (8,128) tiles + a Pallas launch is strictly
    # slower than the fused XLA dot; fall back unless explicitly forced.
    if not force_pallas and (m * out_f * in_f) < (1 << 21):
        out = jnp.dot(x.reshape(m, in_f), weights.T) + bias
        return out.astype(out_dtype).reshape(*lead, out_f)

    x2 = x.reshape(m, in_f)
    b2 = bias.reshape(1, out_f)

    in_bytes = jnp.dtype(x.dtype).itemsize
    out_bytes = jnp.dtype(out_dtype).itemsize
    # Minimum sublane tile depends on dtype packing: 8 (f32), 16 (bf16), 32 (int8/fp8).
    sub = max(8, 32 // in_bytes)

    tm = _round_up(min(tm, _round_up(m, sub)), sub)
    tn = min(tn, _round_up(out_f, 128))
    tk = min(tk, _round_up(in_f, 128))

    use_acc_scratch = out_dtype != jnp.float32

    def est_vmem(tm_, tn_, tk_):
        buf = 2 * (tm_ * tk_ + tn_ * tk_ + tn_) * in_bytes   # double-buffered inputs
        buf += 2 * tm_ * tn_ * out_bytes                     # output block
        if use_acc_scratch:
            buf += tm_ * tn_ * 4
        return buf

    # Keep the working set v7x-safe (64 MiB VMEM / TC there vs 128 on v5e/v6e).
    vmem_cap = 48 * 1024 * 1024
    while est_vmem(tm, tn, tk) > vmem_cap and tk > 512:
        tk //= 2
    while est_vmem(tm, tn, tk) > vmem_cap and tn > 256:
        tn //= 2
    while est_vmem(tm, tn, tk) > vmem_cap and tm > 256:
        tm //= 2

    m_pad = _round_up(m, tm)
    n_pad = _round_up(out_f, tn)
    k_pad = _round_up(in_f, tk)

    # Pads are only materialized when a dim is actually ragged (each pad is an
    # extra full HBM read+write of that operand). Zero padding keeps results
    # exact; padded rows/cols are sliced off below.
    if (m_pad, k_pad) != (m, in_f):
        x2 = jnp.pad(x2, ((0, m_pad - m), (0, k_pad - in_f)))
    w2 = weights
    if (n_pad, k_pad) != (out_f, in_f):
        w2 = jnp.pad(weights, ((0, n_pad - out_f), (0, k_pad - in_f)))
    if n_pad != out_f:
        b2 = jnp.pad(b2, ((0, 0), (0, n_pad - out_f)))

    grid = (m_pad // tm, n_pad // tn, k_pad // tk)

    cost = pl.CostEstimate(
        flops=2 * m_pad * n_pad * k_pad,
        transcendentals=0,
        bytes_accessed=(grid[1] * m_pad * k_pad * in_bytes     # x re-streamed per N tile
                        + grid[0] * n_pad * k_pad * in_bytes   # W re-streamed per M tile
                        + m_pad * n_pad * out_bytes
                        + n_pad * in_bytes),
    )

    in_specs = [
        pl.BlockSpec((tm, tk), lambda i, j, k: (i, k)),   # x tile
        pl.BlockSpec((tn, tk), lambda i, j, k: (j, k)),   # W tile, natural layout
        pl.BlockSpec((1, tn), lambda i, j, k: (0, j)),    # bias tile
    ]
    out_specs = pl.BlockSpec((tm, tn), lambda i, j, k: (i, j))

    if use_acc_scratch:
        kernel = _linear_kernel_acc
        scratch_shapes = [pltpu.VMEM((tm, tn), jnp.float32)]
    else:
        kernel = _linear_kernel_f32
        scratch_shapes = []

    vmem_limit = int(min(max(2 * est_vmem(tm, tn, tk), 32 * 1024 * 1024),
                         48 * 1024 * 1024))

    out_pad = pl.pallas_call(
        kernel,
        out_shape=jax.ShapeDtypeStruct((m_pad, n_pad), out_dtype),
        grid_spec=pltpu.PrefetchScalarGridSpec(
            num_scalar_prefetch=0,
            grid=grid,
            in_specs=in_specs,
            out_specs=out_specs,
            scratch_shapes=scratch_shapes,
        ),
        compiler_params=pltpu.CompilerParams(
            dimension_semantics=("parallel", "parallel", "arbitrary"),
            vmem_limit_bytes=vmem_limit,
        ),
        cost_estimate=cost,
        interpret=interpret,
    )(x2, w2, b2)

    out = out_pad
    if (m_pad, n_pad) != (m, out_f):
        out = out_pad[:m, :out_f]
    return out.reshape(*lead, out_f)


if __name__ == "__main__":
    key = jax.random.PRNGKey(0)
    k_w, k_b, k_x, k_w2, k_b2, k_x2 = jax.random.split(key, 6)

    # --- small shapes matching the module (nn.Linear(32, 32), PyTorch init) ---
    in_features, out_features = 32, 32
    batch, seq = 2, 8
    bound = 1.0 / (in_features ** 0.5)
    weights = jax.random.uniform(
        k_w, (out_features, in_features), jnp.float32, -bound, bound)
    bias = jax.random.uniform(k_b, (out_features,), jnp.float32, -bound, bound)
    x = jax.random.normal(k_x, (batch, seq, in_features), dtype=jnp.float32)

    # force_pallas=True so the Pallas kernel itself is exercised even though
    # this tiny shape would normally take the XLA fast path.
    out = jax.block_until_ready(grad_linear_forward(x, weights, bias, force_pallas=True))
    ref = x @ weights.T + bias
    assert out.shape == (batch, seq, out_features)
    assert jnp.allclose(out, ref, atol=1e-5, rtol=1e-5), "small-shape mismatch vs F.linear"

    # fast-path sanity check (same inputs, no Pallas launch)
    out_fast = jax.block_until_ready(grad_linear_forward(x, weights, bias))
    assert jnp.allclose(out_fast, ref, atol=1e-5, rtol=1e-5), "fast-path mismatch"

    # --- a shape large enough to exercise multiple K steps of the kernel ---
    in2, out2, m2 = 1024, 256, 64
    bound2 = 1.0 / (in2 ** 0.5)
    w_big = jax.random.uniform(k_w2, (out2, in2), jnp.float32, -bound2, bound2)
    b_big = jax.random.uniform(k_b2, (out2,), jnp.float32, -bound2, bound2)
    x_big = jax.random.normal(k_x2, (m2, in2), dtype=jnp.float32)
    out_big = jax.block_until_ready(grad_linear_forward(x_big, w_big, b_big))
    ref_big = x_big @ w_big.T + b_big
    assert jnp.allclose(out_big, ref_big, atol=1e-4, rtol=1e-5), "big-shape mismatch"

    print("KERNEL_OK")
</pallas_src>

<mosaic_0001>
module attributes {stable_mosaic.version = 11 : i64} {
  func.func @_linear_kernel_f32(%arg0: i32, %arg1: i32, %arg2: i32, %arg3: memref<16x128xf32, #tpu.memory_space<vmem>>, %arg4: memref<128x128xf32, #tpu.memory_space<vmem>>, %arg5: memref<1x128xf32, #tpu.memory_space<vmem>>, %arg6: memref<16x128xf32, #tpu.memory_space<vmem>>) attributes {dimension_semantics = [#tpu.dimension_semantics<parallel>, #tpu.dimension_semantics<parallel>, #tpu.dimension_semantics<arbitrary>], iteration_bounds = array<i64: 1, 1, 1>, scalar_prefetch = 0 : i64, scratch_operands = 0 : i64, tpu.core_type = #tpu.core_type<tc>, window_params = [{transform_indices = @transform_0, window_bounds = array<i64: 16, 128>}, {transform_indices = @transform_1, window_bounds = array<i64: 128, 128>}, {transform_indices = @transform_2, window_bounds = array<i64: 1, 128>}, {transform_indices = @transform_3, window_bounds = array<i64: 16, 128>}]} {
    %c0 = arith.constant 0 : index
    %c0_0 = arith.constant 0 : index
    %0 = vector.load %arg3[%c0, %c0_0] : memref<16x128xf32, #tpu.memory_space<vmem>>, vector<16x128xf32>
    %c0_1 = arith.constant 0 : index
    %c0_2 = arith.constant 0 : index
    %1 = vector.load %arg4[%c0_1, %c0_2] : memref<128x128xf32, #tpu.memory_space<vmem>>, vector<128x128xf32>
    %cst = arith.constant dense<0.000000e+00> : vector<16x128xf32>
    %2 = tpu.matmul %0, %1, %cst {dimension_numbers = #tpu.dot_dimension_numbers<[1], [1], [0], [0], [0, 0, 1, 0], [], []>} : vector<16x128xf32>, vector<128x128xf32>, vector<16x128xf32> -> vector<16x128xf32>
    %c0_i32 = arith.constant 0 : i32
    %3 = arith.cmpi eq, %arg2, %c0_i32 : i32
    %4 = arith.extui %3 : i1 to i32
    %c0_i32_3 = arith.constant 0 : i32
    %5 = arith.cmpi ne, %4, %c0_i32_3 : i32
    scf.if %5 {
      %c0_6 = arith.constant 0 : index
      %c0_7 = arith.constant 0 : index
      %9 = vector.load %arg5[%c0_6, %c0_7] : memref<1x128xf32, #tpu.memory_space<vmem>>, vector<1x128xf32>
      %10 = vector.broadcast %9 : vector<1x128xf32> to vector<16x128xf32>
      %11 = arith.addf %2, %10 : vector<16x128xf32>
      %c0_8 = arith.constant 0 : index
      %c0_9 = arith.constant 0 : index
      %12 = vector.load %arg6[%c0_8, %c0_9] : memref<16x128xf32, #tpu.memory_space<vmem>>, vector<16x128xf32>
      tpu.vector_store %arg6[%c0_8, %c0_9], %11 {strides = array<i32>} : memref<16x128xf32, #tpu.memory_space<vmem>>, vector<16x128xf32>,
    } else {
    }
    %c0_i32_4 = arith.constant 0 : i32
    %6 = arith.cmpi sgt, %arg2, %c0_i32_4 : i32
    %7 = arith.extui %6 : i1 to i32
    %c0_i32_5 = arith.constant 0 : i32
    %8 = arith.cmpi ne, %7, %c0_i32_5 : i32
    scf.if %8 {
      %c0_6 = arith.constant 0 : index
      %c0_7 = arith.constant 0 : index
      %9 = vector.load %arg6[%c0_6, %c0_7] : memref<16x128xf32, #tpu.memory_space<vmem>>, vector<16x128xf32>
      %10 = arith.addf %9, %2 : vector<16x128xf32>
      %c0_8 = arith.constant 0 : index
      %c0_9 = arith.constant 0 : index
      %11 = vector.load %arg6[%c0_8, %c0_9] : memref<16x128xf32, #tpu.memory_space<vmem>>, vector<16x128xf32>
      tpu.vector_store %arg6[%c0_8, %c0_9], %10 {strides = array<i32>} : memref<16x128xf32, #tpu.memory_space<vmem>>, vector<16x128xf32>,
    } else {
    }
    return
  }
  func.func @transform_0(%arg0: i32, %arg1: i32, %arg2: i32) -> (i32, i32) {
    %c0_i32 = arith.constant 0 : i32
    return %arg0, %arg2 : i32, i32
  }
  func.func @transform_1(%arg0: i32, %arg1: i32, %arg2: i32) -> (i32, i32) {
    %c0_i32 = arith.constant 0 : i32
    return %arg1, %arg2 : i32, i32
  }
  func.func @transform_2(%arg0: i32, %arg1: i32, %arg2: i32) -> (i32, i32) {
    %c0_i32 = arith.constant 0 : i32
    %c0_i32_0 = arith.constant 0 : i32
    return %c0_i32, %arg1 : i32, i32
  }
  func.func @transform_3(%arg0: i32, %arg1: i32, %arg2: i32) -> (i32, i32) {
    %c0_i32 = arith.constant 0 : i32
    return %arg0, %arg1 : i32, i32
  }
}

</mosaic_0001>

<bundles_post_ra>
// kernel: tpu_custom_call.1
= control target key start
LH: loop header
LB: loop body
LE: loop exit
PB: predicated region body
PF: predicated region fallthrough
CT: control target
= control target key end

     0   :  { %8 = vsyncpa [#allocation3], 0  ;;  %s276_s0 = inlined_call_operand.hbm [shape: f32[16,128], index: 0, kind: input, shape index: {}]   ;;  %s277_s1 = inlined_call_operand.hbm [shape: f32[128,128], index: 1, kind: input, shape index: {}]   ;;  %s278_s2 = inlined_call_operand.vmem [shape: f32[1,128], index: 2, kind: input, shape index: {}]   ;;  %s279_s3 = inlined_call_operand.hbm [shape: f32[16,128], index: 3, kind: output, shape index: {}]  }
   0x1   :  { %9 = vsyncpa [#allocation6], 0 }
   0x2   :  { %10 = vsyncpa [#allocation4], 0  ;;  %s15_s14 = sshll.u32 %s276_s0, 4  ;;  %s230_s15 = smov [#allocation2]   ;;  %s16_s14 = int_to_ptr.hbm [resolvable:$true] %s15_s14 }
   0x3   :  { %s17_s16 = sshll.u32 %s230_s15, 4  ;;  %s28_s19 = sshll.u32 %s277_s1, 4  ;;  %s18_s16 = int_to_ptr.vmem [resolvable:$true] %s17_s16  ;;  %s29_s19 = int_to_ptr.hbm [resolvable:$true] %s28_s19 }
   0x4   :  { %s231_s20 = smov 128   ;;  %s232_s21 = smov 8  }
   0x5   :  { %23 = dma.hbm_to_vmem [thread:$0]  %s16_s14, 256, %s18_s16, [#allocation3], %s231_s20, %s231_s20, %s232_s21  }
   0x6   :  { %s233_s22 = smov [#allocation5]  }
   0x7   :  { %s30_s23 = sshll.u32 %s233_s22, 4  ;;  %s31_s23 = int_to_ptr.vmem [resolvable:$true] %s30_s23 }
   0x8   :  { %36 = dma.hbm_to_vmem [thread:$0]  %s29_s19, 2048, %s31_s23, [#allocation6], %s231_s20, %s231_s20, %s232_s21  }
   0x9   :  { %224 = dma.done.wait [#allocation3], 256  }
   0xa   :  { %225 = vsyncadd [#allocation3], 4294967040 }
   0xb   :  { %226 = dma.done.wait [#allocation6], 2048  }
   0xc   :  { %227 = vsyncadd [#allocation6], 4294965248  ;;  %v64_v0 = vld [vmem:[#allocation5 + $0x78] sm:$0xff]  ;;  %v63_v1 = vld [vmem:[#allocation5 + $0x70] sm:$0xff]  ;;  %s234_s24 = smov [#allocation7]   ;;  %s116_s28 = sshll.u32 %s279_s3, 4  ;;  %s117_s28 = int_to_ptr.hbm [resolvable:$true] %s116_s28 }
   0xd   :  { %65 = vmatpush.xpose.msra.mxu0 %v64_v0  ;;  %130 = vmatpush.xpose.msra.mxu1 %v64_v0  ;;  %v62_v2 = vld [vmem:[#allocation5 + $0x68] sm:$0xff]  ;;  %v61_v3 = vld [vmem:[#allocation5 + $0x60] sm:$0xff]  ;;  %v60_v4 = vld [vmem:[#allocation5 + $0x58] sm:$0xff]  ;;  %s114_s25 = sshll.u32 %s234_s24, 4  ;;  %s115_s25 = int_to_ptr.vmem [resolvable:$true] %s114_s25 }
   0xe   :  { %v59_v5 = vld [vmem:[#allocation5 + $0x50] sm:$0xff]  ;;  %v58_v6 = vld [vmem:[#allocation5 + $0x48] sm:$0xff]  ;;  %v57_v7 = vld [vmem:[#allocation5 + $0x40] sm:$0xff] }
   0xf   :  { %v56_v8 = vld [vmem:[#allocation5 + $0x38] sm:$0xff]  ;;  %v55_v9 = vld [vmem:[#allocation5 + $0x30] sm:$0xff]  ;;  %v54_v10 = vld [vmem:[#allocation5 + $0x28] sm:$0xff] }
  0x10   :  { %v53_v11 = vld [vmem:[#allocation5 + $0x20] sm:$0xff]  ;;  %v52_v12 = vld [vmem:[#allocation5 + $0x18] sm:$0xff]  ;;  %v51_v13 = vld [vmem:[#allocation5 + $0x10] sm:$0xff] }
  0x11   :  { %66 = vmatpush.xpose.msra.mxu0 %v63_v1  ;;  %131 = vmatpush.xpose.msra.mxu1 %v63_v1  ;;  %v50_v14 = vld [vmem:[#allocation5 + $0x8] sm:$0xff]  ;;  %v49_v15 = vld [vmem:[#allocation5] sm:$0xff]  ;;  %v47_v16 = vld [vmem:[#allocation2] sm:$0xff] }
  0x12   :  { %v48_v17 = vld [vmem:[#allocation2 + $0x8] sm:$0xff]  ;;  %v151_v18 = vld [vmem:[%s278_s2] ss:$0 sm:$0xff] }
  0x15   :  { %67 = vmatpush.xpose.msra.mxu0 %v62_v2  ;;  %132 = vmatpush.xpose.msra.mxu1 %v62_v2 }
  0x19   :  { %68 = vmatpush.xpose.msra.mxu0 %v61_v3  ;;  %133 = vmatpush.xpose.msra.mxu1 %v61_v3 }
  0x1d   :  { %69 = vmatpush.xpose.msra.mxu0 %v60_v4  ;;  %134 = vmatpush.xpose.msra.mxu1 %v60_v4 }
  0x21   :  { %70 = vmatpush.xpose.msra.mxu0 %v59_v5  ;;  %135 = vmatpush.xpose.msra.mxu1 %v59_v5 }
  0x25   :  { %71 = vmatpush.xpose.msra.mxu0 %v58_v6  ;;  %136 = vmatpush.xpose.msra.mxu1 %v58_v6 }
  0x29   :  { %72 = vmatpush.xpose.msra.mxu0 %v57_v7  ;;  %137 = vmatpush.xpose.msra.mxu1 %v57_v7 }
  0x2d   :  { %73 = vmatpush.xpose.msra.mxu0 %v56_v8  ;;  %138 = vmatpush.xpose.msra.mxu1 %v56_v8 }
  0x31   :  { %74 = vmatpush.xpose.msra.mxu0 %v55_v9  ;;  %139 = vmatpush.xpose.msra.mxu1 %v55_v9 }
  0x35   :  { %75 = vmatpush.xpose.msra.mxu0 %v54_v10  ;;  %140 = vmatpush.xpose.msra.mxu1 %v54_v10 }
  0x39   :  { %76 = vmatpush.xpose.msra.mxu0 %v53_v11  ;;  %141 = vmatpush.xpose.msra.mxu1 %v53_v11 }
  0x3d   :  { %77 = vmatpush.xpose.msra.mxu0 %v52_v12  ;;  %142 = vmatpush.xpose.msra.mxu1 %v52_v12 }
  0x41   :  { %78 = vmatpush.xpose.msra.mxu0 %v51_v13  ;;  %143 = vmatpush.xpose.msra.mxu1 %v51_v13 }
  0x45   :  { %79 = vmatpush.xpose.msra.mxu0 %v50_v14  ;;  %144 = vmatpush.xpose.msra.mxu1 %v50_v14 }
  0x49   :  { %80 = vmatpush.xpose.msra.mxu0 %v49_v15  ;;  %145 = vmatpush.xpose.msra.mxu1 %v49_v15 }
  0x4c   :  { %81 = vmatmul.f32.vlgmr.msra.gmra.mxu0 %v47_v16  ;;  %84 = vmatmul.f32.vlgmr.msra.gmra.mxu1 %v48_v17 }
  0xc9   :  { %v82_v19 = vpop.f32.mrf.mxu0  ;;  %v85_v20 = vpop.f32.mrf.mxu1 }
  0xca   :  { %v96_v21 = vadd.f32 %v151_v18, %v82_v19  ;;  %v97_v22 = vadd.f32 %v151_v18, %v85_v20 }
  0xcc   :  { %98 = vst [vmem:[#allocation7] sm:$0xff] %v96_v21 }
  0xcd   :  { %99 = vst [vmem:[#allocation7 + $0x8] sm:$0xff] %v97_v22 }
  0xce   :  { %122 = dma.vmem_to_hbm [thread:$0]  %s115_s25, 256, %s117_s28, [#allocation4], %s231_s20, %s231_s20, %s232_s21  }
  0xcf   :  { %228 = dma.done.wait [#allocation4], 256  }
  0xd0   :  { %229 = vsyncadd [#allocation4], 4294967040 }
  0xd1   :  { %127 = vsyncpa [#allocation3], 1 }
  0xd2   :  { %128 = vsyncpa [#allocation6], 1 }
  0xd3   :  { %129 = vsyncpa [#allocation4], 1 }

</bundles_post_ra>
